<compile_context>
chip_gen: v6e
topology: v6e:2x2x1
jax: 0.10.0
libtpu: 0.0.40
codegen_flags: <defaults>
</compile_context>

<pallas_src>
from functools import partial

import jax
import jax.numpy as jnp
from jax.experimental import pallas as pl
from jax.experimental.pallas import tpu as pltpu

EPS = 1e-5  # nn.GroupNorm default


def _vmem_capacity_bytes():
    """Physical VMEM of the current generation; 64 MiB (v7x-safe) fallback."""
    try:
        info = pltpu.get_tpu_info()
        for name in ("vmem_capacity_bytes", "vmem_size_bytes", "vmem_bytes"):
            v = getattr(info, name, None)
            if v:
                return int(v)
    except Exception:
        pass
    return 64 << 20


def _fused_kernel(x_ref, w_ref, bias_ref, o_ref, *, inv_n):
    # One whole sample per grid step: x_ref block is (1, C, HW).
    x = x_ref[0].astype(jnp.float32)                      # (C, HW)

    # GroupNorm(1, C) stats, two-pass in f32 (extra sweep hides under DMA).
    mean = jnp.sum(x) * inv_n
    d = x - mean
    var = jnp.sum(d * d) * inv_n
    inv = jax.lax.rsqrt(var + EPS)

    # Normalized activations are O(1), so the bf16 MXU cast is benign.
    xn = (d * inv).astype(jnp.bfloat16)                   # (C, HW)

    # gamma is pre-folded into w_ref columns, beta into bias_ref (wrapper).
    out = jnp.dot(w_ref[...], xn, preferred_element_type=jnp.float32)
    o_ref[0] = (out + bias_ref[...]).astype(o_ref.dtype)


def _tiled_kernel(x_ref, scale_ref, shift_ref, w_ref, bias_ref, o_ref):
    # One (1, C, T) lane tile of one sample per grid step; per-sample
    # scale = 1/sigma and shift = -mean/sigma arrive as (1,1,1) blocks.
    x = x_ref[0].astype(jnp.float32)                      # (C, T)
    xn = (x * scale_ref[0] + shift_ref[0]).astype(jnp.bfloat16)
    out = jnp.dot(w_ref[...], xn, preferred_element_type=jnp.float32)
    o_ref[0] = (out + bias_ref[...]).astype(o_ref.dtype)


def prenorm(x, gamma, beta, w_conv, b_conv, *, force_tiled=False, lane_tile=None):
    """PreNorm(dim, Conv2d(dim, dim, 1)).forward — x: (B, C, H, W) f32/bf16."""
    B, C, H, W = x.shape
    HW = H * W
    x3 = x.reshape(B, C, HW)                              # metadata-only reshape

    # Fold the GroupNorm affine into the 1x1-conv weight/bias (tiny CxC op,
    # done once in XLA, f32):  out = W@(gamma*xn + beta) + b
    #                              = (W*gamma)@xn + (W@beta + b)
    w2 = w_conv.reshape(C, C).astype(jnp.float32)
    w_g = (w2 * gamma.reshape(1, C).astype(jnp.float32)).astype(jnp.bfloat16)
    bias = (w2 @ beta.reshape(C, 1).astype(jnp.float32)
            + b_conv.reshape(C, 1).astype(jnp.float32))

    # --- VMEM budgeting (generation-aware) ----------------------------------
    item = jnp.dtype(x.dtype).itemsize
    cp = -(-C // 8) * 8
    hwp = -(-HW // 128) * 128
    # Per-element bytes: 2x double-buffered input + output blocks, plus the
    # in-kernel working copies (x f32, d/xn f32, bf16 matmul operand, f32
    # matmul result staging).
    bytes_per_elem = 2 * item + 2 * item + 4 + 4 + 2 + 4
    small = C * C * 2 + C * 4 * 4 + (1 << 16)             # weights/bias + slack
    usable = int(0.8 * _vmem_capacity_bytes())
    fused_need = cp * hwp * bytes_per_elem + small

    if not force_tiled and fused_need <= usable:
        vmem_limit = int(min(usable, max(int(1.25 * fused_need), 32 << 20)))
        # TODO(synk): for HW < 128, pack several samples along the lane axis
        # (segmented stats) to improve vreg/lane utilisation.
        out = pl.pallas_call(
            partial(_fused_kernel, inv_n=1.0 / (C * HW)),
            out_shape=jax.ShapeDtypeStruct((B, C, HW), x.dtype),
            grid_spec=pltpu.PrefetchScalarGridSpec(
                num_scalar_prefetch=0,
                grid=(B,),
                in_specs=[
                    pl.BlockSpec((1, C, HW), lambda b: (b, 0, 0)),
                    pl.BlockSpec((C, C), lambda b: (0, 0)),
                    pl.BlockSpec((C, 1), lambda b: (0, 0)),
                ],
                out_specs=pl.BlockSpec((1, C, HW), lambda b: (b, 0, 0)),
            ),
            compiler_params=pltpu.CompilerParams(
                # TODO(synk): when B == 1 on v7x (2 TCs), prefer the tiled
                # path below so its second parallel axis keeps both cores busy.
                dimension_semantics=("parallel",),
                vmem_limit_bytes=vmem_limit,
            ),
        )(x3, w_g, bias)
        return out.reshape(B, C, H, W)

    # --- Tiled fallback (large C*HW, e.g. v7x 64 MiB VMEM) ------------------
    # Per-sample stats from a cheap fused XLA reduction (one extra HBM read of
    # x — identical traffic to a Pallas stats pass), then a lane-tiled folded
    # matmul with grid=(B, HW_tiles), both axes parallel.
    xf = x3.astype(jnp.float32)
    mean = jnp.mean(xf, axis=(1, 2))
    var = jnp.mean(jnp.square(xf - mean[:, None, None]), axis=(1, 2))
    inv = jax.lax.rsqrt(var + EPS)
    scale = inv.reshape(B, 1, 1)
    shift = (-mean * inv).reshape(B, 1, 1)

    if lane_tile is not None:
        t_lane = int(lane_tile)
    else:
        t_lane = ((usable - small) // (cp * bytes_per_elem * 128)) * 128
        t_lane = int(max(128, min(t_lane, hwp)))
    n_t = -(-HW // t_lane)
    tiled_need = cp * t_lane * bytes_per_elem + small
    vmem_limit = int(min(usable, max(int(1.25 * tiled_need), 32 << 20)))

    out = pl.pallas_call(
        _tiled_kernel,
        out_shape=jax.ShapeDtypeStruct((B, C, HW), x.dtype),
        grid_spec=pltpu.PrefetchScalarGridSpec(
            num_scalar_prefetch=0,
            grid=(B, n_t),
            in_specs=[
                pl.BlockSpec((1, C, t_lane), lambda b, t: (b, 0, t)),
                pl.BlockSpec((1, 1, 1), lambda b, t: (b, 0, 0)),
                pl.BlockSpec((1, 1, 1), lambda b, t: (b, 0, 0)),
                pl.BlockSpec((C, C), lambda b, t: (0, 0)),
                pl.BlockSpec((C, 1), lambda b, t: (0, 0)),
            ],
            out_specs=pl.BlockSpec((1, C, t_lane), lambda b, t: (b, 0, t)),
        ),
        compiler_params=pltpu.CompilerParams(
            dimension_semantics=("parallel", "parallel"),
            vmem_limit_bytes=vmem_limit,
        ),
    )(x3, scale, shift, w_g, bias)
    return out.reshape(B, C, H, W)


def prenorm_ref(x, gamma, beta, w_conv, b_conv):
    """Pure-JAX reference matching PyTorch GroupNorm(1, C) + 1x1 Conv2d."""
    B, C, H, W = x.shape
    xf = x.reshape(B, -1).astype(jnp.float32)
    mean = xf.mean(axis=1, keepdims=True)
    var = ((xf - mean) ** 2).mean(axis=1, keepdims=True)
    y = ((xf - mean) / jnp.sqrt(var + EPS)).reshape(B, C, H, W)
    y = (y * gamma.reshape(1, C, 1, 1).astype(jnp.float32)
         + beta.reshape(1, C, 1, 1).astype(jnp.float32))
    out = jnp.einsum("oc,bchw->bohw", w_conv.reshape(C, C).astype(jnp.float32), y)
    return out + b_conv.reshape(1, C, 1, 1).astype(jnp.float32)


def _make_inputs(key, B, C, H, W, dtype=jnp.float32):
    k_x, k_g, k_b, k_w, k_bc = jax.random.split(key, 5)
    x = jax.random.normal(k_x, (B, C, H, W), dtype=jnp.float32).astype(dtype)
    gamma = 1.0 + 0.1 * jax.random.normal(k_g, (C,), dtype=jnp.float32)
    beta = 0.1 * jax.random.normal(k_b, (C,), dtype=jnp.float32)
    w_conv = jax.random.normal(k_w, (C, C), dtype=jnp.float32) * (1.0 / C ** 0.5)
    b_conv = 0.1 * jax.random.normal(k_bc, (C,), dtype=jnp.float32)
    return x, gamma, beta, w_conv, b_conv


def _check(out, ref, atol, rtol, msg):
    assert out.shape == ref.shape, msg
    assert jnp.allclose(out.astype(jnp.float32), ref, atol=atol, rtol=rtol), msg


if __name__ == "__main__":
    key = jax.random.PRNGKey(0)
    k1, k2, k3, k4 = jax.random.split(key, 4)

    # 1) Small C, f32, fused single-HBM-read path (B=2, C=4, 16x16).
    args = _make_inputs(k1, 2, 4, 16, 16)
    out = jax.block_until_ready(prenorm(*args))
    _check(out, prenorm_ref(*args), 2e-2, 2e-2, "mismatch: fused small-C")

    # 2) Moderate C, f32, HW not a multiple of 128 (no pad/slice copies).
    args = _make_inputs(k2, 2, 32, 8, 9)
    out = jax.block_until_ready(prenorm(*args))
    _check(out, prenorm_ref(*args), 2e-2, 2e-2, "mismatch: fused ragged-HW")

    # 3) bf16 activations end-to-end (halves HBM traffic / VMEM footprint).
    args = _make_inputs(k3, 2, 32, 16, 16, dtype=jnp.bfloat16)
    out = jax.block_until_ready(prenorm(*args))
    assert out.dtype == jnp.bfloat16
    _check(out, prenorm_ref(*args), 5e-2, 5e-2, "mismatch: fused bf16")

    # 4) Forced tiled fallback (the path large C*HW takes on v7x's 64 MiB
    #    VMEM), with a ragged last lane tile (HW=144, tile=128).
    args = _make_inputs(k4, 2, 8, 12, 12)
    out = jax.block_until_ready(prenorm(*args, force_tiled=True, lane_tile=128))
    _check(out, prenorm_ref(*args), 2e-2, 2e-2, "mismatch: tiled fallback")

    print("KERNEL_OK")
</pallas_src>

<mosaic_0001>
module attributes {stable_mosaic.version = 11 : i64} {
  func.func @_fused_kernel(%arg0: i32, %arg1: memref<1x4x256xf32, #tpu.memory_space<vmem>>, %arg2: memref<4x4xbf16, #tpu.memory_space<vmem>>, %arg3: memref<4x1xf32, #tpu.memory_space<vmem>>, %arg4: memref<1x4x256xf32, #tpu.memory_space<vmem>>) attributes {dimension_semantics = [#tpu.dimension_semantics<parallel>], iteration_bounds = array<i64: 2>, scalar_prefetch = 0 : i64, scratch_operands = 0 : i64, tpu.core_type = #tpu.core_type<tc>, window_params = [{transform_indices = @transform_0, window_bounds = array<i64: 1, 4, 256>}, {pipeline_mode = #tpu.pipeline_mode<synchronous>, transform_indices = @transform_1, window_bounds = array<i64: 4, 4>}, {pipeline_mode = #tpu.pipeline_mode<synchronous>, transform_indices = @transform_2, window_bounds = array<i64: 4, 1>}, {transform_indices = @transform_3, window_bounds = array<i64: 1, 4, 256>}]} {
    %c0 = arith.constant 0 : index
    %c0_0 = arith.constant 0 : index
    %c0_1 = arith.constant 0 : index
    %0 = vector.load %arg1[%c0, %c0_0, %c0_1] : memref<1x4x256xf32, #tpu.memory_space<vmem>>, vector<1x4x256xf32>
    %1 = vector.shape_cast %0 : vector<1x4x256xf32> to vector<4x256xf32>
    %2 = vector.shape_cast %1 : vector<4x256xf32> to vector<1x4x256xf32>
    %cst = arith.constant dense<0.000000e+00> : vector<1xf32>
    %3 = vector.multi_reduction <add>, %2, %cst [1, 2] : vector<1x4x256xf32> to vector<1xf32>
    %4 = vector.shape_cast %3 : vector<1xf32> to vector<1x1x1xf32>
    %5 = vector.extract %4[0, 0, 0] : f32 from vector<1x1x1xf32>
    %cst_2 = arith.constant 9.765625E-4 : f32
    %6 = arith.mulf %5, %cst_2 : f32
    %7 = vector.broadcast %6 : f32 to vector<4x256xf32>
    %8 = arith.subf %1, %7 : vector<4x256xf32>
    %9 = arith.mulf %8, %8 : vector<4x256xf32>
    %10 = vector.shape_cast %9 : vector<4x256xf32> to vector<1x4x256xf32>
    %cst_3 = arith.constant dense<0.000000e+00> : vector<1xf32>
    %11 = vector.multi_reduction <add>, %10, %cst_3 [1, 2] : vector<1x4x256xf32> to vector<1xf32>
    %12 = vector.shape_cast %11 : vector<1xf32> to vector<1x1x1xf32>
    %13 = vector.extract %12[0, 0, 0] : f32 from vector<1x1x1xf32>
    %cst_4 = arith.constant 9.765625E-4 : f32
    %14 = arith.mulf %13, %cst_4 : f32
    %cst_5 = arith.constant 9.99999974E-6 : f32
    %15 = arith.addf %14, %cst_5 : f32
    %16 = math.rsqrt %15 : f32
    %17 = vector.broadcast %16 : f32 to vector<4x256xf32>
    %18 = arith.mulf %8, %17 : vector<4x256xf32>
    %19 = arith.truncf %18 : vector<4x256xf32> to vector<4x256xbf16>
    %c0_6 = arith.constant 0 : index
    %c0_7 = arith.constant 0 : index
    %20 = vector.load %arg2[%c0_6, %c0_7] : memref<4x4xbf16, #tpu.memory_space<vmem>>, vector<4x4xbf16>
    %cst_8 = arith.constant dense<0.000000e+00> : vector<4x256xf32>
    %21 = tpu.matmul %20, %19, %cst_8 {dimension_numbers = #tpu.dot_dimension_numbers<[1], [0], [0], [1], [0, 0, 1, 1], [], []>} : vector<4x4xbf16>, vector<4x256xbf16>, vector<4x256xf32> -> vector<4x256xf32>
    %c0_9 = arith.constant 0 : index
    %c0_10 = arith.constant 0 : index
    %22 = vector.load %arg3[%c0_9, %c0_10] : memref<4x1xf32, #tpu.memory_space<vmem>>, vector<4x1xf32>
    %23 = vector.broadcast %22 : vector<4x1xf32> to vector<4x256xf32>
    %24 = arith.addf %21, %23 : vector<4x256xf32>
    %c0_11 = arith.constant 0 : index
    %c0_12 = arith.constant 0 : index
    %c0_13 = arith.constant 0 : index
    %25 = vector.load %arg4[%c0_11, %c0_12, %c0_13] : memref<1x4x256xf32, #tpu.memory_space<vmem>>, vector<1x4x256xf32>
    %26 = vector.shape_cast %25 : vector<1x4x256xf32> to vector<4x256xf32>
    %27 = vector.shape_cast %24 : vector<4x256xf32> to vector<1x4x256xf32>
    tpu.vector_store %arg4[%c0_11, %c0_12, %c0_13], %27 {strides = array<i32>} : memref<1x4x256xf32, #tpu.memory_space<vmem>>, vector<1x4x256xf32>,
    return
  }
  func.func @transform_0(%arg0: i32) -> (i32, i32, i32) {
    %c0_i32 = arith.constant 0 : i32
    %c0_i32_0 = arith.constant 0 : i32
    %c0_i32_1 = arith.constant 0 : i32
    return %arg0, %c0_i32, %c0_i32_0 : i32, i32, i32
  }
  func.func @transform_1(%arg0: i32) -> (i32, i32) {
    %c0_i32 = arith.constant 0 : i32
    %c0_i32_0 = arith.constant 0 : i32
    %c0_i32_1 = arith.constant 0 : i32
    return %c0_i32, %c0_i32_0 : i32, i32
  }
  func.func @transform_2(%arg0: i32) -> (i32, i32) {
    %c0_i32 = arith.constant 0 : i32
    %c0_i32_0 = arith.constant 0 : i32
    %c0_i32_1 = arith.constant 0 : i32
    return %c0_i32, %c0_i32_0 : i32, i32
  }
  func.func @transform_3(%arg0: i32) -> (i32, i32, i32) {
    %c0_i32 = arith.constant 0 : i32
    %c0_i32_0 = arith.constant 0 : i32
    %c0_i32_1 = arith.constant 0 : i32
    return %arg0, %c0_i32, %c0_i32_0 : i32, i32, i32
  }
}

</mosaic_0001>

<bundles_post_ra>
// kernel: tpu_custom_call.1
= control target key start
LH: loop header
LB: loop body
LE: loop exit
PB: predicated region body
PF: predicated region fallthrough
CT: control target
= control target key end

     0   :  { %8 = vsyncpa [#allocation3], 0  ;;  %s739_s0 = inlined_call_operand.hbm [shape: f32[2,4,256], index: 0, kind: input, shape index: {}]   ;;  %s740_s1 = inlined_call_operand.vmem [shape: bf16[4,4], index: 1, kind: input, shape index: {}]   ;;  %s741_s2 = inlined_call_operand.vmem [shape: f32[4,1], index: 2, kind: input, shape index: {}]   ;;  %s742_s3 = inlined_call_operand.hbm [shape: f32[2,4,256], index: 3, kind: output, shape index: {}]  }
   0x1   :  { %10 = vsyncpa [#allocation3 + $0x1], 0 }
   0x2   :  { %11 = vsyncpa [#allocation4], 0 }
   0x3   :  { %13 = vsyncpa [#allocation4 + $0x1], 0  ;;  %s578_s12 = smov 0   ;;  %s580_s13 = smov 0  }
   0x4   :  { %s582_s14 = smov 0   ;;  %s584_s15 = smov 0  }
   0x5 LB: > { %s599_s16 = sadd.s32 4294967295, %s553_s15   ;;  %s385_s17 = sadd.s32 4294967294, %s553_s15   ;;  %s553_s15 = sphi %s584_s15, %s759_s15   ;;  %s549_s14 = sphi %s582_s14, %s758_s14   ;;  %s545_s13 = sphi %s580_s13, %s757_s13   ;;  %s541_s12 = sphi %s578_s12, %s756_s12  }
   0x6   : > { %s603_s18 = sadd.s32 1, %s553_s15   ;;  %s26_s19 = sadd.s32 1, %s549_s14 }
   0x7   : > { %s23_s20 = ssub.s32 %s553_s15, %s603_s18  ;;  %p33_p0 = scmp.ne.s32.totalorder %s549_s14, %s545_s13 }
   0x8   : > { %p24_p1 = scmp.eq.s32.totalorder %s23_s20, 0  ;;  %p34_p2 = scmp.eq.s32.totalorder %s553_s15, 0 }
   0x9   : > { %p39_p3 = scmp.ne.s32.totalorder %s545_s13, %s541_s12  ;;  %p40_p4 = scmp.eq.s32.totalorder %s599_s16, 0 }
   0xa   : > { %s615_s21 = scalar_select %p24_p1, %s549_s14, %s26_s19  }
   0xb   : > { %p617_p5 = por %p34_p2, %p33_p0  ;;  %p621_p6 = por %p40_p4, %p39_p3 }
   0xc   : > { %p105_p7 = scmp.eq.s32.totalorder %s599_s16, 1  ;;  %p111_p8 = scmp.eq.s32.totalorder %s385_s17, 1 }
   0xd   : > { %s746_s23 = scalar_select %p621_p6, 1, 0 }
   0xe   : > { %p421_p10 = scmp.lt.s32.totalorder %s553_s15, 2  ;;  %p628_p11 = por %p105_p7, %p33_p0 }
   0xf   : > { %p632_p12 = por %p111_p8, %p39_p3  ;;  %s137_s26 = sand.u32 1, %s549_s14  }
  0x10   : > { %s747_s24 = scalar_select %p628_p11, 1, 0 }
  0x11   : > { %s748_s25 = scalar_select %p632_p12, 1, 0 }
  0x12   : > { %s401_s27 = sshll.u32 %s553_s15, 7  ;;  %s388_s28 = sshll.u32 %s137_s26, 3 }
  0x13   : > { %s641_s4 = scalar_lea.hbm %s739_s0, %s401_s27  ;;  %s141_s5 = scalar_lea.vmem [#allocation2], %s388_s28 }
  0x14   : > { %s149_s6 = sshll.u32 %s141_s5, 4  ;;  %p645_p13 = pnand %p421_p10, %p617_p5  ;;  %s649_s6 = int_to_ptr.vmem [resolvable:$true] %s149_s6 }
  0x15   : > { %s138_s8 = scalar_lea.sflag [#allocation3], %s137_s26  ;;  %s461_s9 = scalar_lea.hbm %s641_s4, 128 }
  0x16   : > { %p462_p2 = scmp.ne.s32.totalorder %s641_s4, %s461_s9  ;;  %p463_p3 = pneg %p645_p13 }
  0x17   : > { %s466_s17 = scalar_lea.hbm %s739_s0, 256  ;;  %p467_p5 = scmp.lt.s32.totalorder %s641_s4, %s739_s0 }
  0x18   : > { %p464_p4 = pnand %p463_p3, %p462_p2  ;;  %p468_p8 = scmp.lt.s32.totalorder %s466_s17, %s461_s9 }
  0x1a   : > { %p465_p7 = pneg %p464_p4  ;;  %p469_p10 = por %p468_p8, %p467_p5 }
  0x1c   : > { %p470_p9 = pnand %p469_p10, %p465_p7 }
  0x1e   : > { %473 = shalt.err (!%p470_p9)
}
  0x1f   : > { %s474_s22 = scalar_lea.vmem %s649_s6, 128  ;;  %s555_s26 = smov [#allocation2]  }
  0x20   : > { %p475_p0 = scmp.ne.s32.totalorder %s649_s6, %s474_s22  ;;  %s479_s27 = sshll.u32 %s555_s26, 4  ;;  %s480_s27 = int_to_ptr.vmem [resolvable:$false] %s479_s27 }
  0x21   : > { %s481_s28 = scalar_lea.vmem %s480_s27, 256  ;;  %p482_p4 = scmp.lt.s32.totalorder %s649_s6, %s480_s27 }
  0x22   : > { %p477_p1 = pnand %p475_p0, %p463_p3  ;;  %p483_p12 = scmp.lt.s32.totalorder %s481_s28, %s474_s22 }
  0x24   : > { %p478_p2 = pneg %p477_p1  ;;  %p484_p11 = por %p483_p12, %p482_p4 }
  0x26   : > { %p485_p6 = pnand %p484_p11, %p478_p2 }
  0x28   : > { %488 = shalt.err (!%p485_p6)
}
  0x29   : > { %416 = dma.hbm_to_vmem [thread:$0]  (!%p645_p13), %s641_s4, 128, %s649_s6, %s138_s8  }
  0x2a   : > { %p750_p9 = scmp.lt.s32.totalorder %s553_s15, 3  ;;  %p751_p7 = scmp.ge.s32.totalorder %s553_s15, 1 }
  0x2c   : > { %p155_p0 = pnand %p751_p7, %p750_p9 }
  0x2d   : > { %s676_s29 = sand.u32 (!%p155_p0), 1, %s545_s13   ;;  %p752_p6 = scmp.ne.s32.totalorder (!%p155_p0), %s746_s23, 0 }
  0x2e   : > { %158 = sbr.rel (%p155_p0) target bundleno = 762 (0x2fa), region = 32  ;;  %s392_s30 = sshll.u32 (!%p155_p0), %s676_s29, 3 }
  0x2f   : > { %s161_s5 = scalar_lea.sflag (!%p155_p0), [#allocation3], %s676_s29  ;;  %s164_s7 = scalar_lea.vmem (!%p155_p0), [#allocation2], %s392_s30 }
  0x33   : > { %532 = dma.done.wait (%p752_p6), %s161_s5, 128  }
  0x34   : > { %534 = vsyncadd (%p752_p6), %s161_s5, 4294967168  ;;  %vm192_vm0 = vcmask 1043456   ;;  %v188_v0 = vld [vmem:[%s164_s7] sm:$0xff]  ;;  %v556_v26 = vmov 0   ;;  %vm247_vm1 = vcmask 1041408   ;;  %vm243_vm2 = vcmask 31744  }
  0x35   : > { %v190_v1 = vcombine.high %v188_v0, %v188_v0  ;;  %v193_v2 = vsel %vm192_vm0, %v188_v0, 0.0  ;;  %286 = vmatprep.mubr.bf16.mxu0 %v556_v26  ;;  %456 = vset.pattern.permute.xlu1 %v556_v26  ;;  %v237_v27 = vld [vmem:[%s741_s2] sm:$0xf]  ;;  %s402_s22 = sshll.u32 %s599_s16, 7  ;;  %s186_s26 = scalar_lea.vmem [#allocation5], %s392_s30 }
  0x36   : > { %457 = vset.pattern.permute.xlu0 %v556_v26  ;;  %240 = vperm.xlu1 %456, %v237_v27   ;;  %v236_v36 = vld [vmem:[%s740_s1] sm:$0x3]  ;;  %s315_s27 = sshll.u32 %s186_s26, 4  ;;  %s702_s7 = scalar_lea.hbm %s742_s3, %s402_s22  ;;  %s316_s27 = int_to_ptr.vmem [resolvable:$true] %s315_s27 }
  0x37   : > { %v194_v3 = vsel %vm192_vm0, %v190_v1, 0.0  ;;  %p753_p12 = scmp.ne.s32.totalorder %s747_s24, 0  ;;  %s557_s16 = smov [#allocation5]  }
  0x38   : > { %v195_v4 = vadd.f32 %v194_v3, %v193_v2  ;;  %s493_s30 = sshll.u32 %s557_s16, 4  ;;  %s494_s30 = int_to_ptr.vmem [resolvable:$false] %s493_s30 }
  0x39   : > { %s495_s6 = scalar_lea.vmem %s494_s30, 256  ;;  %p496_p3 = scmp.lt.s32.totalorder %s316_s27, %s494_s30 }
  0x3a   : > { %196 = vadd.xlane.f32.xlu0 %v195_v4 }
  0xb1   : > { %v241_v37 = vpop.permute.xlu1 %240 }
  0xc3   : > { %v197_v5 = vpop.xlane.xlu0 %196 }
  0xc4   : > { %v198_v6 = vrot.slane %v197_v5, 4 }
  0xc6   : > { %v199_v7 = vadd.f32 %v198_v6, %v197_v5 }
  0xc8   : > { %v200_v8 = vrot.slane %v199_v7, 2 }
  0xca   : > { %v201_v9 = vadd.f32 %v200_v8, %v199_v7 }
  0xcc   : > { %v202_v10 = vrot.slane %v201_v9, 1 }
  0xce   : > { %v203_v11 = vadd.f32 %v202_v10, %v201_v9 }
  0xd0   : > { %403 = vpush %v203_v11 }
 0x101   : > { %s404_s4 = spop %403 }
 0x102   : > { %s205_s23 = smul.f32 0.0009765625, %s404_s4  ;;  %s301_s4 = scalar_lea.sflag [#allocation4], %s676_s29 }
 0x104   : > { %v206_v12 = vstv %s205_s23  ;;  %s489_s23 = scalar_lea.vmem %s316_s27, 128 }
 0x105   : > { %v207_v13 = vsub.f32 %v188_v0, %v206_v12  ;;  %p490_p11 = scmp.ne.s32.totalorder %s316_s27, %s489_s23  ;;  %p497_p5 = scmp.lt.s32.totalorder %s495_s6, %s489_s23 }
 0x107   : > { %v208_v14 = vmul.f32 %v207_v13, %v207_v13  ;;  %p491_p13 = pnand %p490_p11, %p753_p12  ;;  %p498_p8 = por %p497_p5, %p496_p3 }
 0x109   : > { %v210_v15 = vcombine.high %v208_v14, %v208_v14  ;;  %v212_v16 = vsel %vm192_vm0, %v208_v14, 0.0  ;;  %p492_p1 = pneg %p491_p13 }
 0x10b   : > { %v213_v17 = vsel %vm192_vm0, %v210_v15, 0.0  ;;  %p499_p10 = pnand %p498_p8, %p492_p1 }
 0x10c   : > { %v214_v18 = vadd.f32 %v213_v17, %v212_v16 }
 0x10e   : > { %215 = vadd.xlane.f32.xlu0 %v214_v18 }
 0x197   : > { %v216_v19 = vpop.xlane.xlu0 %215 }
 0x198   : > { %v217_v20 = vrot.slane %v216_v19, 4 }
 0x19a   : > { %v218_v21 = vadd.f32 %v217_v20, %v216_v19 }
 0x19c   : > { %v219_v22 = vrot.slane %v218_v21, 2 }
 0x19e   : > { %v220_v23 = vadd.f32 %v219_v22, %v218_v21 }
 0x1a0   : > { %v221_v24 = vrot.slane %v220_v23, 1 }
 0x1a2   : > { %v222_v25 = vadd.f32 %v221_v24, %v220_v23 }
 0x1a4   : > { %405 = vpush %v222_v25 }
 0x1d5   : > { %s406_s9 = spop %405 }
 0x1d6   : > { %s224_s10 = smul.f32 0.0009765625, %s406_s9 }
 0x1d8   : > { %s225_s11 = sadd.f32 1e-05, %s224_s10 }
 0x1da   : > { %v226_v28 = vstv %s225_s11 }
 0x1db   : > { %459 = vrsqrt.f32 %v226_v28 }
 0x1e8   : > { %v460_v29 = vpop.eup %459 }
 0x1e9   : > { %407 = vpush %v460_v29 }
 0x21a   : > { %s408_s17 = spop %407 }
 0x21b   : > { %v229_v30 = vstv %s408_s17 }
 0x21c   : > { %v230_v31 = vmul.f32 %v229_v30, %v207_v13 }
 0x21e   : > { %v232_v32 = vcombine.high %v230_v31, %v230_v31  ;;  %v234_v33 = vpack.c.bf16 %v230_v31, %v230_v31 }
 0x220   : > { %v235_v34 = vpack.c.bf16 %v232_v32, %v232_v32  ;;  %v249_v35 = vsel %vm247_vm1, %v234_v33, 0 }
 0x222   : > { %394 = vmatprep.subr.msk.bf16.mxu0 %vm247_vm1, %v235_v34 }
 0x223   : > { %269 = vmatpush1.bf16.msra.mxu0 %v249_v35 }
 0x226   : > { %395 = vmatmul.mubr.msk.bf16.vlgmr.msra.gmra.mxu0 %vm243_vm2, %v236_v36 }
 0x2e6   : > { %v288_v38 = vpop.f32.mrf.mxu0 }
 0x2e7   : > { %v289_v40 = vadd.f32 %v288_v38, %v241_v37 }
 0x2e8   : > { %v290_v39 = vpop.f32.mrf.mxu0 }
 0x2e9   : > { %v291_v41 = vadd.f32 %v290_v39, %v241_v37 }
 0x2ea   : > { %v292_v42 = vpop.f32.mrf.mxu0 }
 0x2eb   : > { %v297_v43 = vcombine.low %v289_v40, %v291_v41 }
 0x2ec   : > { %v293_v44 = vpop.f32.mrf.mxu0 }
 0x2ed   : > { %299 = vst [vmem:[%s186_s26] sm:$0xff] %v297_v43 }
 0x2ee   : > { %502 = shalt.err (!%p499_p10)
}
 0x2ef   : > { %s503_s8 = scalar_lea.hbm %s702_s7, 128  ;;  %s507_s10 = scalar_lea.hbm %s742_s3, 256 }
 0x2f0   : > { %p504_p2 = scmp.ne.s32.totalorder %s702_s7, %s503_s8  ;;  %p508_p7 = scmp.lt.s32.totalorder %s702_s7, %s742_s3 }
 0x2f1   : > { %p509_p0 = scmp.lt.s32.totalorder %s507_s10, %s503_s8 }
 0x2f2   : > { %p505_p4 = pnand %p504_p2, %p753_p12 }
 0x2f3   : > { %p510_p6 = por %p509_p0, %p508_p7 }
 0x2f4   : > { %p506_p9 = pneg %p505_p4 }
 0x2f6   : > { %p511_p11 = pnand %p510_p6, %p506_p9 }
 0x2f8   : > { %514 = shalt.err (!%p511_p11)
}
 0x2f9   : > { %411 = dma.vmem_to_hbm [thread:$0]  (%p753_p12), %s316_s27, 128, %s702_s7, %s301_s4  }
 0x2fa PF: > { %s327_s19 = sand.u32 1, %s541_s12   ;;  %p754_p13 = scmp.ne.s32.totalorder %s748_s25, 0 }
 0x2fb   : > { %p755_p1 = scmp.ge.s32.totalorder %s553_s15, 2  ;;  %s328_s20 = scalar_lea.sflag [#allocation4], %s327_s19 }
 0x2fd   : > { %p418_p3 = pnand %p755_p1, %p754_p13 }
 0x2ff   : > { %p419_p5 = pneg %p418_p3 }
 0x301   : > { %536 = dma.done.wait (%p419_p5), %s328_s20, 128  }
 0x302   : > { %538 = vsyncadd (%p419_p5), %s328_s20, 4294967168  ;;  %p16_p8 = scmp.ge.s32.totalorder %s603_s18, 4   ;;  %s756_s12 = smov %s545_s13 }
 0x303   : > { %s757_s13 = smov %s549_s14  ;;  %s758_s14 = smov %s615_s21 }
 0x304   : > { %s759_s15 = smov %s603_s18  ;;  %18 = sbr.rel (!%p16_p8) target bundleno = 5 (0x5), region = 77 }
 0x309   :  { %333 = vsyncpa [#allocation3], 1 }
 0x30a   :  { %335 = vsyncpa [#allocation3 + $0x1], 1 }
 0x30b   :  { %336 = vsyncpa [#allocation4], 1 }
 0x30c   :  { %338 = vsyncpa [#allocation4 + $0x1], 1 }

</bundles_post_ra>
